<compile_context>
chip_gen: v7x
topology: tpu7x:2x2x1
jax: 0.10.0
libtpu: 0.0.40
codegen_flags: <defaults>
</compile_context>

<pallas_src>
import functools

import jax
import jax.numpy as jnp
from jax.experimental import pallas as pl
from jax.experimental.pallas import tpu as pltpu


def _match_kernel(v1_ref, v2_ref, mask_ref, wv2_ref, bv2_ref,
                  wa_ref, wb_ref, w3_ref, bp_ref, out_ref):
    cdt = v1_ref.dtype                       # MXU operand dtype (input dtype)
    bt, tl1, h = v1_ref.shape
    l2 = v2_ref.shape[1]

    v1 = v1_ref[...]                         # (BT, TL1, H)
    v2 = v2_ref[...]                         # (BT, L2, H)
    mask = mask_ref[...]                     # (BT, 1, L2) float32 (0/1)

    # v2_proj = Linear(H, H)(v2): one flattened MXU matmul, f32 accumulation.
    proj = jnp.dot(v2.reshape(bt * l2, h), wv2_ref[...],
                   preferred_element_type=jnp.float32)
    proj = proj + bv2_ref[...].astype(jnp.float32)
    proj_v2 = proj.reshape(bt, l2, h).astype(cdt)

    # similarity = v1 bmm proj_v2^T : contract last dims (no explicit .T).
    sim = jnp.einsum("bqd,bkd->bqk", v1, proj_v2,
                     preferred_element_type=jnp.float32)      # (BT, TL1, L2)

    # masked_fill(v2_mask.unsqueeze(1).bool(), -1e-07): nonzero mask -> -1e-07
    # (faithful to the PyTorch module, even though -1e-07 is likely an
    #  upstream bug vs. -1e9).
    sim = jnp.where(mask != 0.0, jnp.float32(-1e-07), sim)

    # softmax over L2; reciprocal goes to the EUP slot.
    m = jnp.max(sim, axis=-1, keepdims=True)
    e = jnp.exp(sim - m)
    attn = e * pl.reciprocal(jnp.sum(e, axis=-1, keepdims=True), approx=True)

    # weighted sum of v2 (batched, f32 accumulate).
    v2_wsum = jnp.einsum("bqk,bkd->bqd", attn.astype(cdt), v2,
                         preferred_element_type=jnp.float32)  # (BT, TL1, H)

    # fusion = [v1, wsum, v1 - wsum, v1 * wsum]; final Linear folded as
    #   out = v1 @ (W0 + W2) + wsum @ (W1 - W2) + (v1 * wsum) @ W3 + b
    rows = bt * tl1
    v1f = v1.reshape(rows, h)
    wsf = v2_wsum.astype(cdt).reshape(rows, h)
    prodf = (v1.astype(jnp.float32) * v2_wsum).astype(cdt).reshape(rows, h)

    out = jnp.dot(v1f, wa_ref[...], preferred_element_type=jnp.float32)
    out = out + jnp.dot(wsf, wb_ref[...], preferred_element_type=jnp.float32)
    out = out + jnp.dot(prodf, w3_ref[...], preferred_element_type=jnp.float32)
    out = jnp.maximum(out + bp_ref[...].astype(jnp.float32), 0.0)

    # TODO(synk): dropout with p > 0 not implemented (module default p=0).
    out_ref[...] = out.reshape(bt, tl1, 2 * h).astype(out_ref.dtype)


def _pick_block_l1(l1, cap=256):
    """Largest multiple-of-8 divisor of l1 that is <= cap, else full l1."""
    best = None
    d = 8
    while d <= min(l1, cap):
        if l1 % d == 0:
            best = d
        d += 8
    return best if best is not None else l1


def _pick_block_b(b, block_l1, l2, h, itemsize,
                  rows_target=256, v2_budget_bytes=8 << 20):
    """Largest divisor of b with rows <= rows_target and v2 block <= budget."""
    cap = max(1, rows_target // max(block_l1, 1))
    best = 1
    for d in range(1, min(b, cap) + 1):
        if b % d == 0 and d * l2 * h * itemsize <= v2_budget_bytes:
            best = d
    return best


@jax.jit
def match_module(v1, v2, v2_mask, w_v2, b_v2, w_proj, b_proj):
    """Pallas implementation of MatchModule.forward.

    v1:      (B, L1, H)
    v2:      (B, L2, H)
    v2_mask: (B, L2)  (uint8/bool semantics: nonzero -> masked_fill)
    w_v2:    (H, H)    pre-transposed (in, out)
    b_v2:    (H,)
    w_proj:  (4H, 2H)  pre-transposed (in, out)
    b_proj:  (2H,)
    returns: (B, L1, 2H) in v1.dtype
    """
    B, L1, H = v1.shape
    _, L2, _ = v2.shape
    cdt = v1.dtype
    itemsize = jnp.dtype(cdt).itemsize

    block_l1 = _pick_block_l1(L1)
    block_b = _pick_block_b(B, block_l1, L2, H, itemsize)
    grid = (B // block_b, L1 // block_l1)

    # Split the (4H, 2H) projection weight and fold the concat algebraically.
    w0 = w_proj[0 * H:1 * H]
    w1 = w_proj[1 * H:2 * H]
    w2 = w_proj[2 * H:3 * H]
    w3 = w_proj[3 * H:4 * H]
    wa = (w0 + w2).astype(cdt)     # multiplies v1
    wb = (w1 - w2).astype(cdt)     # multiplies v2_wsum
    w3 = w3.astype(cdt)            # multiplies v1 * v2_wsum
    wv2 = w_v2.astype(cdt)

    mask3 = v2_mask.astype(jnp.float32).reshape(B, 1, L2)
    b_v2_2d = b_v2.astype(jnp.float32).reshape(1, H)
    b_p_2d = b_proj.astype(jnp.float32).reshape(1, 2 * H)

    # Scoped-VMEM estimate for the chosen tiles (double-buffered blocks + f32
    # intermediates), with 2x headroom, clamped to a v7x-safe budget.
    rows = block_b * block_l1
    f32 = 4
    est = (2 * block_b * block_l1 * H * itemsize            # v1 blocks
           + 2 * block_b * L2 * H * itemsize                # v2 blocks
           + 2 * block_b * L2 * f32                         # mask blocks
           + 2 * rows * 2 * H * itemsize                    # out blocks
           + 2 * (H * H + 3 * H * 2 * H) * itemsize         # weights
           + 2 * 3 * H * f32                                # biases
           + block_b * L2 * H * f32                         # proj_v2
           + 3 * rows * L2 * f32                            # sim / exp / attn
           + 2 * rows * H * f32                             # wsum, product
           + rows * 2 * H * f32)                            # out accumulator
    vmem_limit = int(min(max(2 * est, 8 << 20), 48 << 20))

    out_shape = jax.ShapeDtypeStruct((B, L1, 2 * H), cdt)

    return pl.pallas_call(
        _match_kernel,
        out_shape=out_shape,
        grid_spec=pltpu.PrefetchScalarGridSpec(
            num_scalar_prefetch=0,
            grid=grid,
            in_specs=[
                pl.BlockSpec((block_b, block_l1, H), lambda b, l: (b, l, 0)),  # v1
                pl.BlockSpec((block_b, L2, H), lambda b, l: (b, 0, 0)),        # v2
                pl.BlockSpec((block_b, 1, L2), lambda b, l: (b, 0, 0)),        # mask
                pl.BlockSpec((H, H), lambda b, l: (0, 0)),                     # w_v2
                pl.BlockSpec((1, H), lambda b, l: (0, 0)),                     # b_v2
                pl.BlockSpec((H, 2 * H), lambda b, l: (0, 0)),                 # Wa
                pl.BlockSpec((H, 2 * H), lambda b, l: (0, 0)),                 # Wb
                pl.BlockSpec((H, 2 * H), lambda b, l: (0, 0)),                 # W3
                pl.BlockSpec((1, 2 * H), lambda b, l: (0, 0)),                 # b_proj
            ],
            out_specs=pl.BlockSpec((block_b, block_l1, 2 * H),
                                   lambda b, l: (b, l, 0)),
        ),
        compiler_params=pltpu.CompilerParams(
            dimension_semantics=("parallel", "parallel"),
            vmem_limit_bytes=vmem_limit),
    )(v1, v2, mask3, wv2, b_v2_2d, wa, wb, w3, b_p_2d)


def match_module_ref(v1, v2, v2_mask, w_v2, b_v2, w_proj, b_proj):
    """Pure-JAX reference mirroring the PyTorch forward."""
    proj_v2 = v2 @ w_v2 + b_v2
    sim = jnp.einsum("bik,bjk->bij", v1, proj_v2)
    sim = jnp.where(v2_mask[:, None, :] != 0, jnp.float32(-1e-07), sim)
    attn = jax.nn.softmax(sim, axis=2)
    v2_wsum = jnp.einsum("bij,bjk->bik", attn, v2)
    fusion = jnp.concatenate([v1, v2_wsum, v1 - v2_wsum, v1 * v2_wsum], axis=2)
    return jax.nn.relu(fusion @ w_proj + b_proj)


if __name__ == "__main__":
    B, L, H = 2, 8, 32

    key = jax.random.PRNGKey(0)
    k1, k2, k3, k4, k5, k6, k7 = jax.random.split(key, 7)

    v1 = jax.random.normal(k1, (B, L, H), dtype=jnp.float32)
    v2 = jax.random.normal(k2, (B, L, H), dtype=jnp.float32)
    v2_mask = (jax.random.uniform(k3, (B, L)) < 0.3).astype(jnp.uint8)

    # PyTorch-style uniform init, stored pre-transposed (in, out).
    bound1 = 1.0 / jnp.sqrt(jnp.float32(H))
    w_v2 = jax.random.uniform(k4, (H, H), jnp.float32, -bound1, bound1)
    b_v2 = jax.random.uniform(k5, (H,), jnp.float32, -bound1, bound1)

    bound2 = 1.0 / jnp.sqrt(jnp.float32(4 * H))
    w_proj = jax.random.uniform(k6, (4 * H, 2 * H), jnp.float32, -bound2, bound2)
    b_proj = jax.random.uniform(k7, (2 * H,), jnp.float32, -bound2, bound2)

    out = match_module(v1, v2, v2_mask, w_v2, b_v2, w_proj, b_proj)
    out = jax.block_until_ready(out)

    ref = match_module_ref(v1, v2, v2_mask, w_v2, b_v2, w_proj, b_proj)
    assert out.shape == (B, L, 2 * H), out.shape
    # Tolerance loosened slightly for the approx softmax reciprocal and the
    # algebraic weight fold (accumulation stays f32).
    max_diff = float(jnp.max(jnp.abs(out.astype(jnp.float32) - ref)))
    assert jnp.allclose(out.astype(jnp.float32), ref, atol=1e-2, rtol=1e-2), max_diff

    print("KERNEL_OK")
</pallas_src>

<mosaic_0001>
module attributes {stable_mosaic.version = 11 : i64} {
  func.func @_match_kernel(%arg0: i32, %arg1: i32, %arg2: memref<2x8x32xf32, #tpu.memory_space<vmem>>, %arg3: memref<2x8x32xf32, #tpu.memory_space<vmem>>, %arg4: memref<2x1x8xf32, #tpu.memory_space<vmem>>, %arg5: memref<32x32xf32, #tpu.memory_space<vmem>>, %arg6: memref<1x32xf32, #tpu.memory_space<vmem>>, %arg7: memref<32x64xf32, #tpu.memory_space<vmem>>, %arg8: memref<32x64xf32, #tpu.memory_space<vmem>>, %arg9: memref<32x64xf32, #tpu.memory_space<vmem>>, %arg10: memref<1x64xf32, #tpu.memory_space<vmem>>, %arg11: memref<2x8x64xf32, #tpu.memory_space<vmem>>) attributes {dimension_semantics = [#tpu.dimension_semantics<parallel>, #tpu.dimension_semantics<parallel>], iteration_bounds = array<i64: 1, 1>, scalar_prefetch = 0 : i64, scratch_operands = 0 : i64, tpu.core_type = #tpu.core_type<tc>, window_params = [{transform_indices = @transform_0, window_bounds = array<i64: 2, 8, 32>}, {transform_indices = @transform_1, window_bounds = array<i64: 2, 8, 32>}, {transform_indices = @transform_2, window_bounds = array<i64: 2, 1, 8>}, {pipeline_mode = #tpu.pipeline_mode<synchronous>, transform_indices = @transform_3, window_bounds = array<i64: 32, 32>}, {pipeline_mode = #tpu.pipeline_mode<synchronous>, transform_indices = @transform_4, window_bounds = array<i64: 1, 32>}, {pipeline_mode = #tpu.pipeline_mode<synchronous>, transform_indices = @transform_5, window_bounds = array<i64: 32, 64>}, {pipeline_mode = #tpu.pipeline_mode<synchronous>, transform_indices = @transform_6, window_bounds = array<i64: 32, 64>}, {pipeline_mode = #tpu.pipeline_mode<synchronous>, transform_indices = @transform_7, window_bounds = array<i64: 32, 64>}, {pipeline_mode = #tpu.pipeline_mode<synchronous>, transform_indices = @transform_8, window_bounds = array<i64: 1, 64>}, {transform_indices = @transform_9, window_bounds = array<i64: 2, 8, 64>}]} {
    %c0 = arith.constant 0 : index
    %c0_0 = arith.constant 0 : index
    %c0_1 = arith.constant 0 : index
    %0 = vector.load %arg2[%c0, %c0_0, %c0_1] : memref<2x8x32xf32, #tpu.memory_space<vmem>>, vector<2x8x32xf32>
    %c0_2 = arith.constant 0 : index
    %c0_3 = arith.constant 0 : index
    %c0_4 = arith.constant 0 : index
    %1 = vector.load %arg3[%c0_2, %c0_3, %c0_4] : memref<2x8x32xf32, #tpu.memory_space<vmem>>, vector<2x8x32xf32>
    %c0_5 = arith.constant 0 : index
    %c0_6 = arith.constant 0 : index
    %c0_7 = arith.constant 0 : index
    %2 = vector.load %arg4[%c0_5, %c0_6, %c0_7] : memref<2x1x8xf32, #tpu.memory_space<vmem>>, vector<2x1x8xf32>
    %3 = vector.shape_cast %1 : vector<2x8x32xf32> to vector<16x32xf32>
    %c0_8 = arith.constant 0 : index
    %c0_9 = arith.constant 0 : index
    %4 = vector.load %arg5[%c0_8, %c0_9] : memref<32x32xf32, #tpu.memory_space<vmem>>, vector<32x32xf32>
    %cst = arith.constant dense<0.000000e+00> : vector<16x32xf32>
    %5 = tpu.matmul %3, %4, %cst {dimension_numbers = #tpu.dot_dimension_numbers<[1], [0], [0], [1], [0, 0, 1, 1], [], []>} : vector<16x32xf32>, vector<32x32xf32>, vector<16x32xf32> -> vector<16x32xf32>
    %c0_10 = arith.constant 0 : index
    %c0_11 = arith.constant 0 : index
    %6 = vector.load %arg6[%c0_10, %c0_11] : memref<1x32xf32, #tpu.memory_space<vmem>>, vector<1x32xf32>
    %7 = vector.broadcast %6 : vector<1x32xf32> to vector<16x32xf32>
    %8 = arith.addf %5, %7 : vector<16x32xf32>
    %9 = vector.shape_cast %8 : vector<16x32xf32> to vector<2x8x32xf32>
    "tpu.trace_start"() <{level = 10 : i32, message = "bqd,bkd->bqk"}> : () -> ()
    %cst_12 = arith.constant dense<0.000000e+00> : vector<2x8x8xf32>
    %10 = tpu.matmul %0, %9, %cst_12 {dimension_numbers = #tpu.dot_dimension_numbers<[2], [2], [1], [1], [0, 0, 0, 1, 1, 1], [0], [0]>} : vector<2x8x32xf32>, vector<2x8x32xf32>, vector<2x8x8xf32> -> vector<2x8x8xf32>
    %cst_13 = arith.constant 0.000000e+00 : f32
    "tpu.trace_stop"() : () -> ()
    %11 = vector.broadcast %cst_13 : f32 to vector<2x1x8xf32>
    %12 = arith.cmpf one, %2, %11 : vector<2x1x8xf32>
    %cst_14 = arith.constant -1.000000e-07 : f32
    %13 = vector.shape_cast %12 : vector<2x1x8xi1> to vector<2x1x8xi1>
    %14 = vector.broadcast %13 : vector<2x1x8xi1> to vector<2x8x8xi1>
    %15 = vector.broadcast %cst_14 : f32 to vector<2x8x8xf32>
    %16 = arith.select %14, %15, %10 : vector<2x8x8xi1>, vector<2x8x8xf32>
    %cst_15 = arith.constant dense<0xFF800000> : vector<2x8xf32>
    %17 = vector.multi_reduction <maximumf>, %16, %cst_15 [2] : vector<2x8x8xf32> to vector<2x8xf32>
    %18 = vector.shape_cast %17 : vector<2x8xf32> to vector<2x8x1xf32>
    %19 = vector.broadcast %18 : vector<2x8x1xf32> to vector<2x8x8xf32>
    %20 = arith.subf %16, %19 : vector<2x8x8xf32>
    %21 = math.exp %20 : vector<2x8x8xf32>
    %cst_16 = arith.constant dense<0.000000e+00> : vector<2x8xf32>
    %22 = vector.multi_reduction <add>, %21, %cst_16 [2] : vector<2x8x8xf32> to vector<2x8xf32>
    %23 = vector.shape_cast %22 : vector<2x8xf32> to vector<2x8x1xf32>
    %24 = tpu.reciprocal %23 {approx = true} : vector<2x8x1xf32> -> vector<2x8x1xf32>
    %25 = vector.broadcast %24 : vector<2x8x1xf32> to vector<2x8x8xf32>
    %26 = arith.mulf %21, %25 : vector<2x8x8xf32>
    "tpu.trace_start"() <{level = 10 : i32, message = "bqk,bkd->bqd"}> : () -> ()
    %cst_17 = arith.constant dense<0.000000e+00> : vector<2x8x32xf32>
    %27 = tpu.matmul %26, %1, %cst_17 {dimension_numbers = #tpu.dot_dimension_numbers<[2], [1], [1], [2], [0, 0, 0, 1, 1, 2], [0], [0]>} : vector<2x8x8xf32>, vector<2x8x32xf32>, vector<2x8x32xf32> -> vector<2x8x32xf32>
    "tpu.trace_stop"() : () -> ()
    %28 = vector.shape_cast %0 : vector<2x8x32xf32> to vector<16x32xf32>
    %29 = vector.shape_cast %27 : vector<2x8x32xf32> to vector<16x32xf32>
    %30 = arith.mulf %0, %27 : vector<2x8x32xf32>
    %31 = vector.shape_cast %30 : vector<2x8x32xf32> to vector<16x32xf32>
    %c0_18 = arith.constant 0 : index
    %c0_19 = arith.constant 0 : index
    %32 = vector.load %arg7[%c0_18, %c0_19] : memref<32x64xf32, #tpu.memory_space<vmem>>, vector<32x64xf32>
    %cst_20 = arith.constant dense<0.000000e+00> : vector<16x64xf32>
    %33 = tpu.matmul %28, %32, %cst_20 {dimension_numbers = #tpu.dot_dimension_numbers<[1], [0], [0], [1], [0, 0, 1, 1], [], []>} : vector<16x32xf32>, vector<32x64xf32>, vector<16x64xf32> -> vector<16x64xf32>
    %c0_21 = arith.constant 0 : index
    %c0_22 = arith.constant 0 : index
    %34 = vector.load %arg8[%c0_21, %c0_22] : memref<32x64xf32, #tpu.memory_space<vmem>>, vector<32x64xf32>
    %cst_23 = arith.constant dense<0.000000e+00> : vector<16x64xf32>
    %35 = tpu.matmul %29, %34, %cst_23 {dimension_numbers = #tpu.dot_dimension_numbers<[1], [0], [0], [1], [0, 0, 1, 1], [], []>} : vector<16x32xf32>, vector<32x64xf32>, vector<16x64xf32> -> vector<16x64xf32>
    %36 = arith.addf %33, %35 : vector<16x64xf32>
    %c0_24 = arith.constant 0 : index
    %c0_25 = arith.constant 0 : index
    %37 = vector.load %arg9[%c0_24, %c0_25] : memref<32x64xf32, #tpu.memory_space<vmem>>, vector<32x64xf32>
    %cst_26 = arith.constant dense<0.000000e+00> : vector<16x64xf32>
    %38 = tpu.matmul %31, %37, %cst_26 {dimension_numbers = #tpu.dot_dimension_numbers<[1], [0], [0], [1], [0, 0, 1, 1], [], []>} : vector<16x32xf32>, vector<32x64xf32>, vector<16x64xf32> -> vector<16x64xf32>
    %39 = arith.addf %36, %38 : vector<16x64xf32>
    %c0_27 = arith.constant 0 : index
    %c0_28 = arith.constant 0 : index
    %40 = vector.load %arg10[%c0_27, %c0_28] : memref<1x64xf32, #tpu.memory_space<vmem>>, vector<1x64xf32>
    %41 = vector.broadcast %40 : vector<1x64xf32> to vector<16x64xf32>
    %42 = arith.addf %39, %41 : vector<16x64xf32>
    %cst_29 = arith.constant 0.000000e+00 : f32
    %43 = vector.broadcast %cst_29 : f32 to vector<16x64xf32>
    %44 = arith.maximumf %42, %43 : vector<16x64xf32>
    %45 = vector.shape_cast %44 : vector<16x64xf32> to vector<2x8x64xf32>
    %c0_30 = arith.constant 0 : index
    %c0_31 = arith.constant 0 : index
    %c0_32 = arith.constant 0 : index
    %46 = vector.load %arg11[%c0_30, %c0_31, %c0_32] : memref<2x8x64xf32, #tpu.memory_space<vmem>>, vector<2x8x64xf32>
    tpu.vector_store %arg11[%c0_30, %c0_31, %c0_32], %45 {strides = array<i32>} : memref<2x8x64xf32, #tpu.memory_space<vmem>>, vector<2x8x64xf32>,
    return
  }
  func.func @transform_0(%arg0: i32, %arg1: i32) -> (i32, i32, i32) {
    %c0_i32 = arith.constant 0 : i32
    %c0_i32_0 = arith.constant 0 : i32
    return %arg0, %arg1, %c0_i32 : i32, i32, i32
  }
  func.func @transform_1(%arg0: i32, %arg1: i32) -> (i32, i32, i32) {
    %c0_i32 = arith.constant 0 : i32
    %c0_i32_0 = arith.constant 0 : i32
    %c0_i32_1 = arith.constant 0 : i32
    return %arg0, %c0_i32, %c0_i32_0 : i32, i32, i32
  }
  func.func @transform_2(%arg0: i32, %arg1: i32) -> (i32, i32, i32) {
    %c0_i32 = arith.constant 0 : i32
    %c0_i32_0 = arith.constant 0 : i32
    %c0_i32_1 = arith.constant 0 : i32
    return %arg0, %c0_i32, %c0_i32_0 : i32, i32, i32
  }
  func.func @transform_3(%arg0: i32, %arg1: i32) -> (i32, i32) {
    %c0_i32 = arith.constant 0 : i32
    %c0_i32_0 = arith.constant 0 : i32
    %c0_i32_1 = arith.constant 0 : i32
    return %c0_i32, %c0_i32_0 : i32, i32
  }
  func.func @transform_4(%arg0: i32, %arg1: i32) -> (i32, i32) {
    %c0_i32 = arith.constant 0 : i32
    %c0_i32_0 = arith.constant 0 : i32
    %c0_i32_1 = arith.constant 0 : i32
    return %c0_i32, %c0_i32_0 : i32, i32
  }
  func.func @transform_5(%arg0: i32, %arg1: i32) -> (i32, i32) {
    %c0_i32 = arith.constant 0 : i32
    %c0_i32_0 = arith.constant 0 : i32
    %c0_i32_1 = arith.constant 0 : i32
    return %c0_i32, %c0_i32_0 : i32, i32
  }
  func.func @transform_6(%arg0: i32, %arg1: i32) -> (i32, i32) {
    %c0_i32 = arith.constant 0 : i32
    %c0_i32_0 = arith.constant 0 : i32
    %c0_i32_1 = arith.constant 0 : i32
    return %c0_i32, %c0_i32_0 : i32, i32
  }
  func.func @transform_7(%arg0: i32, %arg1: i32) -> (i32, i32) {
    %c0_i32 = arith.constant 0 : i32
    %c0_i32_0 = arith.constant 0 : i32
    %c0_i32_1 = arith.constant 0 : i32
    return %c0_i32, %c0_i32_0 : i32, i32
  }
  func.func @transform_8(%arg0: i32, %arg1: i32) -> (i32, i32) {
    %c0_i32 = arith.constant 0 : i32
    %c0_i32_0 = arith.constant 0 : i32
    %c0_i32_1 = arith.constant 0 : i32
    return %c0_i32, %c0_i32_0 : i32, i32
  }
  func.func @transform_9(%arg0: i32, %arg1: i32) -> (i32, i32, i32) {
    %c0_i32 = arith.constant 0 : i32
    %c0_i32_0 = arith.constant 0 : i32
    return %arg0, %arg1, %c0_i32 : i32, i32, i32
  }
}

</mosaic_0001>

<bundles_post_ra>
// kernel: match_module.1
= control target key start
LH: loop header
LB: loop body
LE: loop exit
PB: predicated region body
PF: predicated region fallthrough
CT: control target
= control target key end

     0   :  { %vm50_vm0 = vcmask 261120   ;;  %s1122_s0 = inlined_call_operand.vmem [shape: f32[2,8,32], index: 0, kind: input, shape index: {}]   ;;  %s1123_s1 = inlined_call_operand.vmem [shape: f32[2,8,32], index: 1, kind: input, shape index: {}]   ;;  %s1124_s2 = inlined_call_operand.vmem [shape: f32[2,1,8], index: 2, kind: input, shape index: {}]   ;;  %s1125_s3 = inlined_call_operand.vmem [shape: f32[32,32], index: 3, kind: input, shape index: {}]   ;;  %s1126_s4 = inlined_call_operand.vmem [shape: f32[1,32], index: 4, kind: input, shape index: {}]   ;;  %s1127_s5 = inlined_call_operand.vmem [shape: f32[32,64], index: 5, kind: input, shape index: {}]   ;;  %s1128_s6 = inlined_call_operand.vmem [shape: f32[32,64], index: 6, kind: input, shape index: {}]   ;;  %s1129_s7 = inlined_call_operand.vmem [shape: f32[32,64], index: 7, kind: input, shape index: {}]   ;;  %s1130_s8 = inlined_call_operand.vmem [shape: f32[1,64], index: 8, kind: input, shape index: {}]   ;;  %s1131_s9 = inlined_call_operand.hbm [shape: f32[2,8,64], index: 9, kind: output, shape index: {}]  }
   0x1   :  { %v39_v0 = vld [vmem:[%s1125_s3] sm:$0xff]  ;;  %v40_v1 = vld [vmem:[%s1125_s3 + $0x8] sm:$0xff]  ;;  %v41_v2 = vld [vmem:[%s1125_s3 + $0x10] sm:$0xff] }
   0x2   :  { %v864_v3 = vpack.c.bf16 %v40_v1, %v39_v0  ;;  %v42_v4 = vld [vmem:[%s1125_s3 + $0x18] sm:$0xff]  ;;  %v35_v5 = vld [vmem:[%s1123_s1] sm:$0xff] }
   0x3   :  { %v868_v6 = vpack.c.bf16 %v42_v4, %v41_v2  ;;  %808 = vmatprep.mubr.msk.f32.mxu1 %vm50_vm0, %v35_v5 }
   0x4   :  { %14 = vsyncpa [#allocation3], 0  ;;  %865 = vmatprep.subr.bf16.mxu1 %v864_v3  ;;  %v1013_v7 = vld [vmem:[%s1123_s1 + $0x8] sm:$0xff]  ;;  %v938_v8 = vmov 0.0   ;;  %vm939_vm1 = vmmov 0   ;;  %v1027_v13 = vld [vmem:[%s1122_s0] sm:$0xff]  ;;  %v288_v16 = vlaneseq }
   0x5   :  { %867 = vmatpush3.bf16.msra.mxu1 %v864_v3  ;;  %v752_v9 = vld [vmem:[%s1126_s4] ss:$0 sm:$0xff]  ;;  %v1038_v15 = vld [vmem:[%s1122_s0 + $0x8] sm:$0xff]  ;;  %v38_v19 = vld [vmem:[%s1124_s2 + $0x1] sm:$0x1]  ;;  %v940_v21 = vmov 0  }
   0x6   :  { %869 = vmatprep.subr.bf16.mxu1 %v868_v6  ;;  %v37_v17 = vld [vmem:[%s1124_s2] sm:$0x1]  ;;  %v289_v18 = vshrl.u32 %v288_v16, 7  ;;  %vm285_vm3 = vcmp.ne.f32.partialorder %v38_v19, 0.0  ;;  %vm300_vm5 = vcmask 64512   ;;  %v476_v45 = vld [vmem:[%s1128_s6 + $0x8] sm:$0xff] }
   0x7   :  { %vm284_vm2 = vcmp.ne.f32.partialorder %v37_v17, 0.0  ;;  %v287_v24 = vsel %vm285_vm3, 1, %v940_v21  ;;  %v475_v44 = vld [vmem:[%s1128_s6] sm:$0xff]  ;;  %v477_v53 = vld [vmem:[%s1128_s6 + $0x10] sm:$0xff]  ;;  %v478_v54 = vld [vmem:[%s1128_s6 + $0x18] sm:$0xff]  ;;  %vm733_vm7 = vcmask 523264  }
   0x8   :  { %v290_v20 = vsub.s32 0, %v289_v18  ;;  %v286_v22 = vsel %vm284_vm2, 1, %v940_v21  ;;  %v872_v46 = vpack.c.bf16 %v476_v45, %v475_v44  ;;  %v876_v55 = vpack.c.bf16 %v478_v54, %v477_v53  ;;  %v471_v56 = vld [vmem:[%s1127_s5] sm:$0xff]  ;;  %v472_v57 = vld [vmem:[%s1127_s5 + $0x8] sm:$0xff]  ;;  %v473_v60 = vld [vmem:[%s1127_s5 + $0x10] sm:$0xff] }
   0x9   :  { %871 = vmatpush3.bf16.msra.mxu1 %v868_v6  ;;  %v880_v58 = vpack.c.bf16 %v472_v57, %v471_v56  ;;  %v474_v61 = vld [vmem:[%s1127_s5 + $0x18] sm:$0xff]  ;;  %v635_v1 = vld [vmem:[%s1129_s7] sm:$0xff]  ;;  %v636_v2 = vld [vmem:[%s1129_s7 + $0x8] sm:$0xff] }
   0xa   :  { %811 = vmatprep.subr.mxu1 %v938_v8  ;;  %v291_v23 = vrot.slane %v286_v22, %v290_v20  ;;  %v295_v25 = vrot.slane %v287_v24, %v290_v20  ;;  %873 = vmatprep.subr.bf16.mxu0 %v872_v46  ;;  %v884_v63 = vpack.c.bf16 %v474_v61, %v473_v60  ;;  %v638_v6 = vld [vmem:[%s1129_s7 + $0x18] sm:$0xff] }
   0xb   :  { %875 = vmatpush3.bf16.msra.mxu0 %v872_v46  ;;  %v888_v4 = vpack.c.bf16 %v636_v2, %v635_v1 }
   0xc   :  { %809 = vmatmul.mubr.msk.f32.vlgmr.msra.gmra.mrb[0].mxu1 %vm50_vm0, %v1013_v7  ;;  %vm296_vm4 = vcmp.eq.s32.totalorder %v291_v23, 1  ;;  %vm297_vm6 = vcmp.eq.s32.totalorder %v295_v25, 1  ;;  %877 = vmatprep.subr.bf16.mxu0 %v876_v55 }
   0xd   :  { %813 = vmatprep.mubr.msk.f32.mxu1 %vm939_vm1, %v938_v8 }
   0xf   :  { %879 = vmatpush3.bf16.msra.mxu0 %v876_v55 }
  0x10   :  { %881 = vmatprep.subr.bf16.mxu0 %v880_v58 }
  0xdf   :  { %v810_v10 = vpop.f32.mrb[0].mxu1 }
  0xe0   :  { %v123_v11 = vpop.f32.mrb[1].mxu1  ;;  %v129_v14 = vadd.f32 %v810_v10, %v752_v9  ;;  %v767_v10 = vld [vmem:[%s1130_s8] ss:$0 sm:$0xff] }
  0xe1   :  { %v124_v12 = vadd.f32 %v752_v9, %v123_v11 }
  0xe3   :  { %812 = vmatpush3.xpose.msk.msra.mxu1 %vm50_vm0, %v124_v12 }
  0xe4   :  { %816 = vmatprep.subr.mxu1 %v938_v8 }
  0xe6   :  { %814 = vmatmul.mubr.msk.f32.vlgmr.msra.gmra.mrb[2].mxu1 %vm50_vm0, %v1027_v13 }
  0xe7   :  { %817 = vmatpush3.xpose.msk.msra.mxu1 %vm50_vm0, %v129_v14  ;;  %818 = vmatprep.mubr.msk.f32.mxu1 %vm939_vm1, %v938_v8 }
  0xe8   :  { %821 = vmatprep.subr.mxu1 %v938_v8 }
  0xea   :  { %819 = vmatmul.mubr.msk.f32.vlgmr.msra.gmra.mrb[4].mxu1 %vm50_vm0, %v1038_v15 }
  0xeb   :  { %822 = vmatpush3.msra.mxu1 %v35_v5  ;;  %823 = vmatprep.mubr.msk.f32.mxu1 %vm939_vm1, %v938_v8  ;;  %v637_v5 = vld [vmem:[%s1129_s7 + $0x10] sm:$0xff]  ;;  %s941_s7 = smov [#allocation2]  }
  0xec   :  { %826 = vmatprep.subr.mxu1 %v938_v8  ;;  %s741_s0 = sshll.u32 %s941_s7, 4  ;;  %s742_s0 = int_to_ptr.vmem [resolvable:$true] %s741_s0 }
  0xed   :  { %s914_s26 = scalar_lea.vmem %s742_s0, 256  ;;  %p919_p1 = scmp.lt.s32.totalorder %s742_s0, %s742_s0 }
  0xee   :  { %p915_p0 = scmp.ne.s32.totalorder %s742_s0, %s914_s26  ;;  %p920_p2 = scmp.lt.s32.totalorder %s914_s26, %s914_s26 }
  0xf0   :  { %p921_p3 = por %p920_p2, %p919_p1 }
  0xf2   :  { %p922_p4 = pnand %p921_p3, %p915_p0 }
 0x1b9   :  { %v204_v26 = vpop.f32.mrb[2].mxu1 }
 0x1ba   :  { %v298_v27 = vsel %vm296_vm4, -1e-07, %v204_v26  ;;  %v815_v28 = vpop.f32.mrb[3].mxu1 }
 0x1bb   :  { %v301_v29 = vsel %vm300_vm5, %v298_v27, -inf }
 0x1bc   :  { %302 = vmax.xlane.f32.xlu0 %v301_v29 }
 0x1bd   :  { %v280_v30 = vpop.f32.mrb[4].mxu1 }
 0x1be   :  { %v299_v31 = vsel %vm297_vm6, -1e-07, %v280_v30  ;;  %v820_v32 = vpop.f32.mrb[5].mxu1 }
 0x1bf   :  { %v304_v33 = vsel %vm300_vm5, %v299_v31, -inf }
 0x1c0   :  { %305 = vmax.xlane.f32.xlu0 %v304_v33 }
 0x249   :  { %v303_v34 = vpop.xlane.xlu0 %302 }
 0x24a   :  { %v307_v35 = vsub.f32 %v298_v27, %v303_v34 }
 0x24c   :  { %v309_v36 = vmul.f32 1.442695, %v307_v35 }
 0x24d   :  { %v306_v37 = vpop.xlane.xlu0 %305 }
 0x24e   :  { %906 = vpow2.f32 %v309_v36  ;;  %v308_v38 = vsub.f32 %v299_v31, %v306_v37 }
 0x250   :  { %v311_v39 = vmul.f32 1.442695, %v308_v38 }
 0x252   :  { %908 = vpow2.f32 %v311_v39 }
 0x258   :  { %v907_v40 = vpop.eup %906 }
 0x259   :  { %v313_v41 = vsel %vm300_vm5, %v907_v40, 0.0 }
 0x25a   :  { %314 = vadd.xlane.f32.xlu1 %v313_v41 }
 0x25c   :  { %v909_v42 = vpop.eup %908 }
 0x25d   :  { %v316_v43 = vsel %vm300_vm5, %v909_v42, 0.0 }
 0x25e   :  { %317 = vadd.xlane.f32.xlu1 %v316_v43 }
 0x2e7   :  { %v315_v47 = vpop.xlane.xlu1 %314 }
 0x2e8   :  { %910 = vrcp.f32 %v315_v47 }
 0x2eb   :  { %v318_v48 = vpop.xlane.xlu1 %317 }
 0x2ec   :  { %912 = vrcp.f32 %v318_v48 }
 0x2f2   :  { %v911_v49 = vpop.eup %910 }
 0x2f3   :  { %v321_v50 = vmul.f32 %v911_v49, %v907_v40 }
 0x2f5   :  { %824 = vmatmul.mubr.msk.f32.vlgmr.msra.gmra.mrb[6].mxu1 %vm300_vm5, %v321_v50 }
 0x2f6   :  { %v913_v51 = vpop.eup %912  ;;  %827 = vmatpush3.msra.mxu1 %v1013_v7  ;;  %828 = vmatprep.mubr.msk.f32.mxu1 %vm939_vm1, %v938_v8  ;;  %v892_v7 = vpack.c.bf16 %v638_v6, %v637_v5 }
 0x2f7   :  { %v322_v52 = vmul.f32 %v913_v51, %v909_v42 }
 0x2f9   :  { %829 = vmatmul.mubr.msk.f32.vlgmr.msra.gmra.mrb[8].mxu1 %vm300_vm5, %v322_v52 }
 0x3c8   :  { %v392_v59 = vpop.f32.mrb[6].mxu1 }
 0x3c9   :  { %v825_v62 = vpop.f32.mrb[7].mxu1  ;;  %839 = vmatprep.mubr.msk.f32.mxu0 %vm50_vm0, %v392_v59  ;;  %v469_v8 = vmul.f32 %v392_v59, %v1027_v13 }
 0x3cc   :  { %v465_v0 = vpop.f32.mrb[8].mxu1 }
 0x3cd   :  { %v830_v3 = vpop.f32.mrb[9].mxu1  ;;  %840 = vmatmul.mubr.msk.f32.vlgmr.msra.gmra.mrb[0].mxu0 %vm50_vm0, %v465_v0  ;;  %v470_v9 = vmul.f32 %v465_v0, %v1038_v15 }
 0x3ce   :  { %883 = vmatpush3.bf16.msra.mxu0 %v880_v58  ;;  %850 = vmatprep.mubr.msk.f32.mxu0 %vm50_vm0, %v1027_v13 }
 0x3cf   :  { %885 = vmatprep.subr.bf16.mxu0 %v884_v63 }
 0x3d2   :  { %887 = vmatpush3.bf16.msra.mxu0 %v884_v63 }
 0x3d3   :  { %889 = vmatprep.subr.bf16.mxu0 %v888_v4 }
 0x3d5   :  { %851 = vmatmul.mubr.msk.f32.vlgmr.msra.gmra.mrb[0].mxu0 %vm50_vm0, %v1038_v15 }
 0x3d6   :  { %891 = vmatpush3.bf16.msra.mxu0 %v888_v4  ;;  %861 = vmatprep.mubr.msk.f32.mxu0 %vm50_vm0, %v469_v8 }
 0x3d7   :  { %893 = vmatprep.subr.bf16.mxu0 %v892_v7 }
 0x3da   :  { %895 = vmatpush3.bf16.msra.mxu0 %v892_v7 }
 0x3dd   :  { %862 = vmatmul.mubr.msk.f32.vlgmr.msra.gmra.mrb[0].mxu0 %vm50_vm0, %v470_v9 }
 0x4b0   :  { %v863_v11 = vpop.f32.mrb[0].mxu0 }
 0x4b1   :  { %v730_v12 = vadd.f32 %v863_v11, %v767_v10  ;;  %v711_v13 = vpop.f32.mrb[1].mxu0 }
 0x4b2   :  { %v729_v14 = vadd.f32 %v767_v10, %v711_v13 }
 0x4b3   :  { %v732_v16 = vmax.f32 %v730_v12, 0.0 }
 0x4b4   :  { %v731_v17 = vmax.f32 %v729_v14, 0.0 }
 0x4b5   :  { %735 = vst.msk [vmem:[#allocation2 + $0x8] sm:$0xff] %vm733_vm7, %v732_v16 }
 0x4b6   :  { %734 = vst.msk [vmem:[#allocation2] sm:$0xff] %vm733_vm7, %v731_v17 }
 0x4b7   :  { %925 = shalt.err (!%p922_p4)
}
 0x4b8   :  { %s926_s27 = scalar_lea.hbm %s1131_s9, 256 }
 0x4b9   :  { %p927_p5 = scmp.ne.s32.totalorder %s1131_s9, %s926_s27  ;;  %p930_p6 = scmp.lt.u32.totalorder %s926_s27, %s1131_s9 }
 0x4bb   :  { %p932_p7 = pnand %p930_p6, %p927_p5 }
 0x4bd   :  { %935 = shalt.err (!%p932_p7)
}
 0x4be   :  { %s942_s11 = smov 128   ;;  %s943_s12 = smov 8  }
 0x4bf   :  { %747 = dma.vmem_to_hbm [thread:$0]  %s742_s0, 256, %s1131_s9, [#allocation3], %s942_s11, %s942_s11, %s943_s12  }
 0x4c0   :  { %936 = dma.done.wait [#allocation3], 256  }
 0x4c1   :  { %937 = vsyncadd [#allocation3], 4294967040 }
 0x4c2   :  { %751 = vsyncpa [#allocation3], 1 }

</bundles_post_ra>
